<compile_context>
chip_gen: v7x
topology: tpu7x:2x2x1
jax: 0.10.0
libtpu: 0.0.40
codegen_flags: <defaults>
</compile_context>

<pallas_src>
import functools

import jax
import jax.numpy as jnp
from jax import lax
from jax.experimental import pallas as pl
from jax.experimental.pallas import tpu as pltpu


def _round_up(x, m):
    return ((x + m - 1) // m) * m


def _vmem_limit_bytes():
    """Generation-aware VMEM limit: half of physical, capped at 64 MiB.

    v5e/v6e (128 MiB VMEM) -> 64 MiB, v7x (64 MiB VMEM) -> 32 MiB,
    unknown / query failure -> conservative 32 MiB.
    """
    cap = 64 * 1024 * 1024
    try:
        info_cap = int(pltpu.get_tpu_info().vmem_capacity_bytes)
        if info_cap > 0:
            cap = info_cap
    except Exception:  # pragma: no cover - e.g. interpret mode / old jax
        pass
    return min(cap // 2, 64 * 1024 * 1024)


def _pick_tile_rows(B, H, W, Cin, Cout, kH, kW, *, fuse_kh, vmem_limit_bytes,
                    min_grid_steps=8):
    """Pick an image-row tile that (a) divides H, (b) keeps the x block lane
    dim a multiple of 128 (or full H*W), (c) fits the VMEM budget with
    double-buffered x/out blocks AND the (double-buffered) weight/bias blocks,
    (d) leaves enough grid steps for megacore + pipelining when possible."""
    kwc = kW * Cout
    cin_pad = _round_up(Cin, 8)
    w_pad = _round_up(W, 8)
    out_lane = _round_up(kwc, 128)

    # Per-image-row bytes of the double-buffered x and out blocks (f32 VMEM,
    # last dim padded to 128 lanes).
    bytes_per_row = 4 * (cin_pad * W + kH * w_pad * out_lane) * 2

    # Constant-index weight/bias blocks (conservatively counted double-buffered)
    if fuse_kh:
        w_bytes = 4 * cin_pad * _round_up(kH * kwc, 128)
    else:
        w_bytes = 4 * kH * cin_pad * _round_up(kwc, 128)
    b_bytes = 4 * 8 * _round_up(kH * kwc, 128)
    fixed = 2 * (w_bytes + b_bytes) + 2 * 1024 * 1024  # + scratch/acc headroom

    budget = max(vmem_limit_bytes // 2 - fixed, bytes_per_row)
    max_rows = max(1, budget // bytes_per_row)
    unroll_cap = 64 if W % 8 == 0 else 16   # per-row store fallback unrolls

    valid = [t for t in range(1, H + 1)
             if H % t == 0 and (t == H or (t * W) % 128 == 0)]
    fitting = [t for t in valid if t <= min(max_rows, unroll_cap)]
    if not fitting:
        # TODO(synk): awkward H/W (no aligned divisor under the caps) falls
        # back to the smallest legal tile; may over-unroll or under-fill VMEM.
        return min(valid)

    # Prefer the largest tile that still leaves >= min_grid_steps grid steps
    # (keeps both v7x TensorCores busy and gives the pipeline overlap room).
    good = [t for t in fitting if B * (H // t) >= min_grid_steps]
    if good:
        return max(good)
    # Not enough total rows: take the smallest tile that still amortizes the
    # ~0.35us per-step overhead (>= ~1K pixels per step), else the largest.
    decent = [t for t in fitting if t * W >= 1024]
    if decent:
        return min(decent)
    return max(fitting)


def _pick_chunk_rows(tile_rows, W, lane_width, *, acc_budget_bytes=2 * 1024 * 1024,
                     max_pixels=2048):
    """Split the per-step matmul into chunks of <= ~max_pixels rows so the f32
    accumulator stays under acc_budget_bytes while every MXU call stays long."""
    lane_pad = _round_up(lane_width, 128)
    target = min(max_pixels, max(W, acc_budget_bytes // (4 * lane_pad)))
    if tile_rows * W <= target:
        return tile_rows
    cands = [c for c in range(1, tile_rows + 1)
             if tile_rows % c == 0 and c * W <= target and (c * W) % 128 == 0]
    return max(cands) if cands else tile_rows


def _make_convtr_kernel(tile_rows, chunk_rows, W, kH, kwc, fuse_kh):
    n_chunks = tile_rows // chunk_rows
    cpix = chunk_rows * W
    bulk_store = (W % 8 == 0)   # reshape (cpix,kwc)->(rows,W,kwc) is layout-free

    def store_kh(o_ref, kh, c, vals):
        # vals: (cpix, kwc) results for kernel row kh of chunk c,
        # row-major [(h, w), (kw, co)] -> output layout (h, kh, w, kw*co).
        if bulk_store:
            o_ref[c * chunk_rows:(c + 1) * chunk_rows, kh, :, :] = (
                vals.reshape(chunk_rows, W, kwc))
        else:
            for r in range(chunk_rows):              # bounded static unroll
                o_ref[c * chunk_rows + r, kh, :, :] = vals[r * W:(r + 1) * W, :]

    if fuse_kh:
        def kernel(x_ref, w_ref, b_ref, o_ref):
            # x_ref: (Cin, tile_rows*W)   NCHW pixels of tile_rows image rows
            # w_ref: (Cin, kH*kW*Cout)    columns ordered (kh, kw, co)
            # b_ref: (1, kH*kW*Cout)
            # o_ref: (tile_rows, kH, W, kW*Cout)
            bias = b_ref[...]
            w_all = w_ref[...]
            for c in range(n_chunks):                # static
                xs = x_ref[:, c * cpix:(c + 1) * cpix]          # (Cin, cpix)
                acc = lax.dot_general(
                    xs, w_all, dimension_numbers=(((0,), (0,)), ((), ())),
                    preferred_element_type=jnp.float32)          # (cpix, kH*kwc)
                acc = (acc + bias).astype(o_ref.dtype)
                for kh in range(kH):                 # free lane slice (kwc%128==0)
                    store_kh(o_ref, kh, c, acc[:, kh * kwc:(kh + 1) * kwc])
    else:
        def kernel(x_ref, w_ref, b_ref, o_ref):
            # x_ref: (Cin, tile_rows*W)
            # w_ref: (kH, Cin, kW*Cout)   per-kh weight, columns ordered (kw, co)
            # b_ref: (1, kW*Cout)
            # o_ref: (tile_rows, kH, W, kW*Cout)
            bias = b_ref[...]
            for kh in range(kH):                     # static (kH == 2)
                w_kh = w_ref[kh]                     # (Cin, kwc)
                for c in range(n_chunks):            # static
                    xs = x_ref[:, c * cpix:(c + 1) * cpix]      # (Cin, cpix)
                    # Transposed-LHS matmul: contract Cin straight out of the
                    # NCHW layout -> no input transpose anywhere.
                    acc = lax.dot_general(
                        xs, w_kh, dimension_numbers=(((0,), (0,)), ((), ())),
                        preferred_element_type=jnp.float32)      # (cpix, kwc)
                    acc = (acc + bias).astype(o_ref.dtype)
                    store_kh(o_ref, kh, c, acc)

    return kernel


@functools.partial(jax.jit, static_argnames=("out_format", "out_dtype"))
def expansion_block_forward(x, weight, bias, *, out_format="NHWC",
                            out_dtype=jnp.float32):
    """ConvTranspose2d(Cin -> Cout, kernel_size=2, stride=2) forward.

    x:      (B, Cin, H, W)     NCHW float32 (PyTorch layout, read w/o transpose)
    weight: (Cin, Cout, 2, 2)  PyTorch ConvTranspose2d weight layout
    bias:   (Cout,)
    out_dtype: output dtype (jnp.bfloat16 halves the dominant HBM write stream;
               f32 default keeps strict PyTorch parity).
    returns NHWC (B, 2H, 2W, Cout) by default (zero layout traffic), or NCHW
            (B, Cout, 2H, 2W) with out_format="NCHW" (one extra HBM pass).
    """
    B, Cin, H, W = x.shape
    Cin_w, Cout, kH, kW = weight.shape
    assert Cin_w == Cin
    kwc = kW * Cout
    fuse_kh = (kwc % 128 == 0)   # deep levels: fused-kh matmul, lane-dense slices

    vmem_limit = _vmem_limit_bytes()
    tile_rows = _pick_tile_rows(B, H, W, Cin, Cout, kH, kW,
                                fuse_kh=fuse_kh, vmem_limit_bytes=vmem_limit)
    lane_width = kH * kwc if fuse_kh else kwc
    chunk_rows = _pick_chunk_rows(tile_rows, W, lane_width)
    n_row_tiles = H // tile_rows

    # Free (metadata-only) reshape of the NCHW input; no HBM transpose.
    x3 = x.reshape(B, Cin, H * W)
    # Tiny parameter rearrangements (O(Cin*Cout*kH*kW) elements).
    if fuse_kh:
        w_r = weight.transpose(0, 2, 3, 1).reshape(Cin, kH * kwc)  # [ci,(kh,kw,co)]
        b_r = jnp.tile(bias, kH * kW).reshape(1, kH * kwc)
        w_spec = pl.BlockSpec((Cin, kH * kwc), lambda b, i: (0, 0))
        b_spec = pl.BlockSpec((1, kH * kwc), lambda b, i: (0, 0))
    else:
        w_r = weight.transpose(2, 0, 3, 1).reshape(kH, Cin, kwc)   # [kh,ci,(kw,co)]
        b_r = jnp.tile(bias, kW).reshape(1, kwc)
        w_spec = pl.BlockSpec((kH, Cin, kwc), lambda b, i: (0, 0, 0))
        b_spec = pl.BlockSpec((1, kwc), lambda b, i: (0, 0))

    out = pl.pallas_call(
        _make_convtr_kernel(tile_rows, chunk_rows, W, kH, kwc, fuse_kh),
        out_shape=jax.ShapeDtypeStruct((B, H, kH, W, kwc), out_dtype),
        grid=(B, n_row_tiles),
        in_specs=[
            pl.BlockSpec((None, Cin, tile_rows * W), lambda b, i: (b, 0, i)),
            w_spec,
            b_spec,
        ],
        out_specs=pl.BlockSpec((None, tile_rows, kH, W, kwc),
                               lambda b, i: (b, i, 0, 0, 0)),
        compiler_params=pltpu.CompilerParams(
            dimension_semantics=("parallel", "parallel"),
            vmem_limit_bytes=vmem_limit),
    )(x3, w_r, b_r)

    # (B, H, kH, W, kW*Cout) is a pure row-major reshape of NHWC (free).
    y_nhwc = out.reshape(B, kH * H, kW * W, Cout)
    if out_format == "NHWC":
        return y_nhwc
    elif out_format == "NCHW":
        # Optional PyTorch-layout parity; costs one extra pass over the output.
        return jnp.transpose(y_nhwc, (0, 3, 1, 2))
    else:
        raise ValueError(f"unknown out_format: {out_format}")


def _reference_convtr(x, weight, bias):
    """Pure-jnp reference (same math, no Pallas), NCHW output."""
    B, Cin, H, W = x.shape
    _, Cout, kH, kW = weight.shape
    y = jnp.einsum("bchw,cokl->bohklw", x, weight)      # (B, Cout, H, kH, kW, W)
    y = jnp.transpose(y, (0, 1, 2, 3, 5, 4))            # (B, Cout, H, kH, W, kW)
    y = y.reshape(B, Cout, H * kH, W * kW)
    return y + bias[None, :, None, None]


def _run_case(key, B, Cin, Cout, H, W, *, atol=1e-4, rtol=1e-4):
    kH, kW = 2, 2
    kx, kwt, kb = jax.random.split(key, 3)
    x = jax.random.normal(kx, (B, Cin, H, W), dtype=jnp.float32)
    weight = jax.random.normal(kwt, (Cin, Cout, kH, kW), dtype=jnp.float32) * 0.1
    bias = jax.random.normal(kb, (Cout,), dtype=jnp.float32) * 0.1

    y_nhwc = jax.block_until_ready(expansion_block_forward(x, weight, bias))
    y_nchw = jax.block_until_ready(
        expansion_block_forward(x, weight, bias, out_format="NCHW"))

    ref = _reference_convtr(x, weight, bias)
    assert y_nhwc.shape == (B, 2 * H, 2 * W, Cout), y_nhwc.shape
    assert y_nchw.shape == (B, Cout, 2 * H, 2 * W), y_nchw.shape
    assert jnp.allclose(y_nhwc, jnp.transpose(ref, (0, 2, 3, 1)),
                        atol=atol, rtol=rtol), "NHWC mismatch vs reference"
    assert jnp.allclose(y_nchw, ref, atol=atol, rtol=rtol), \
        "NCHW mismatch vs reference"


if __name__ == "__main__":
    key = jax.random.PRNGKey(0)
    k1, k2 = jax.random.split(key)

    # ExpansionBlock(in_channels=4, widthf=2) -> out_channels = 2
    # (shallow level: kW*Cout < 128 -> per-kh matmul path).
    _run_case(k1, B=2, Cin=4, Cout=2, H=16, W=16)

    # Deeper UNet level: kW*Cout = 128 -> fused-kh lane-dense path.
    _run_case(k2, B=1, Cin=128, Cout=64, H=8, W=8)

    print("KERNEL_OK")
</pallas_src>

<mosaic_0001>
module attributes {stable_mosaic.version = 11 : i64} {
  func.func @kernel(%arg0: i32, %arg1: i32, %arg2: memref<1x4x256xf32, #tpu.memory_space<vmem>>, %arg3: memref<2x4x4xf32, #tpu.memory_space<vmem>>, %arg4: memref<1x4xf32, #tpu.memory_space<vmem>>, %arg5: memref<1x16x2x16x4xf32, #tpu.memory_space<vmem>>) attributes {dimension_semantics = [#tpu.dimension_semantics<parallel>, #tpu.dimension_semantics<parallel>], iteration_bounds = array<i64: 2, 1>, scalar_prefetch = 0 : i64, scratch_operands = 0 : i64, tpu.core_type = #tpu.core_type<tc>, window_params = [{transform_indices = @transform_0, window_bounds = array<i64: 1, 4, 256>}, {pipeline_mode = #tpu.pipeline_mode<synchronous>, transform_indices = @transform_1, window_bounds = array<i64: 2, 4, 4>}, {pipeline_mode = #tpu.pipeline_mode<synchronous>, transform_indices = @transform_2, window_bounds = array<i64: 1, 4>}, {transform_indices = @transform_3, window_bounds = array<i64: 1, 16, 2, 16, 4>}]} {
    %c0 = arith.constant 0 : index
    %c0_0 = arith.constant 0 : index
    %0 = vector.load %arg4[%c0, %c0_0] : memref<1x4xf32, #tpu.memory_space<vmem>>, vector<1x4xf32>
    %c0_1 = arith.constant 0 : index
    %c0_2 = arith.constant 0 : index
    %c0_3 = arith.constant 0 : index
    %1 = vector.load %arg3[%c0_1, %c0_2, %c0_3] : memref<2x4x4xf32, #tpu.memory_space<vmem>>, vector<1x4x4xf32>
    %2 = vector.shape_cast %1 : vector<1x4x4xf32> to vector<4x4xf32>
    %c0_4 = arith.constant 0 : index
    %c0_5 = arith.constant 0 : index
    %c0_6 = arith.constant 0 : index
    %3 = vector.load %arg2[%c0_4, %c0_5, %c0_6] : memref<1x4x256xf32, #tpu.memory_space<vmem>>, vector<1x4x256xf32>
    %4 = vector.shape_cast %3 : vector<1x4x256xf32> to vector<4x256xf32>
    %cst = arith.constant dense<0.000000e+00> : vector<256x4xf32>
    %5 = tpu.matmul %4, %2, %cst {dimension_numbers = #tpu.dot_dimension_numbers<[0], [0], [1], [1], [0, 1, 1, 1], [], []>} : vector<4x256xf32>, vector<4x4xf32>, vector<256x4xf32> -> vector<256x4xf32>
    %6 = vector.broadcast %0 : vector<1x4xf32> to vector<256x4xf32>
    %7 = arith.addf %5, %6 : vector<256x4xf32>
    %8 = vector.shape_cast %7 : vector<256x4xf32> to vector<16x16x4xf32>
    %c0_7 = arith.constant 0 : index
    %c0_8 = arith.constant 0 : index
    %c0_9 = arith.constant 0 : index
    %c0_10 = arith.constant 0 : index
    %c0_11 = arith.constant 0 : index
    %9 = vector.load %arg5[%c0_7, %c0_8, %c0_9, %c0_10, %c0_11] : memref<1x16x2x16x4xf32, #tpu.memory_space<vmem>>, vector<1x16x1x16x4xf32>
    %10 = vector.shape_cast %9 : vector<1x16x1x16x4xf32> to vector<16x16x4xf32>
    %11 = vector.shape_cast %8 : vector<16x16x4xf32> to vector<1x16x1x16x4xf32>
    tpu.vector_store %arg5[%c0_7, %c0_8, %c0_9, %c0_10, %c0_11], %11 {strides = array<i32>} : memref<1x16x2x16x4xf32, #tpu.memory_space<vmem>>, vector<1x16x1x16x4xf32>,
    %c1 = arith.constant 1 : index
    %c0_12 = arith.constant 0 : index
    %c0_13 = arith.constant 0 : index
    %12 = vector.load %arg3[%c1, %c0_12, %c0_13] : memref<2x4x4xf32, #tpu.memory_space<vmem>>, vector<1x4x4xf32>
    %13 = vector.shape_cast %12 : vector<1x4x4xf32> to vector<4x4xf32>
    %c0_14 = arith.constant 0 : index
    %c0_15 = arith.constant 0 : index
    %c0_16 = arith.constant 0 : index
    %14 = vector.load %arg2[%c0_14, %c0_15, %c0_16] : memref<1x4x256xf32, #tpu.memory_space<vmem>>, vector<1x4x256xf32>
    %15 = vector.shape_cast %14 : vector<1x4x256xf32> to vector<4x256xf32>
    %cst_17 = arith.constant dense<0.000000e+00> : vector<256x4xf32>
    %16 = tpu.matmul %15, %13, %cst_17 {dimension_numbers = #tpu.dot_dimension_numbers<[0], [0], [1], [1], [0, 1, 1, 1], [], []>} : vector<4x256xf32>, vector<4x4xf32>, vector<256x4xf32> -> vector<256x4xf32>
    %17 = vector.broadcast %0 : vector<1x4xf32> to vector<256x4xf32>
    %18 = arith.addf %16, %17 : vector<256x4xf32>
    %19 = vector.shape_cast %18 : vector<256x4xf32> to vector<16x16x4xf32>
    %c0_18 = arith.constant 0 : index
    %c0_19 = arith.constant 0 : index
    %c1_20 = arith.constant 1 : index
    %c0_21 = arith.constant 0 : index
    %c0_22 = arith.constant 0 : index
    %20 = vector.load %arg5[%c0_18, %c0_19, %c1_20, %c0_21, %c0_22] : memref<1x16x2x16x4xf32, #tpu.memory_space<vmem>>, vector<1x16x1x16x4xf32>
    %21 = vector.shape_cast %20 : vector<1x16x1x16x4xf32> to vector<16x16x4xf32>
    %22 = vector.shape_cast %19 : vector<16x16x4xf32> to vector<1x16x1x16x4xf32>
    tpu.vector_store %arg5[%c0_18, %c0_19, %c1_20, %c0_21, %c0_22], %22 {strides = array<i32>} : memref<1x16x2x16x4xf32, #tpu.memory_space<vmem>>, vector<1x16x1x16x4xf32>,
    return
  }
  func.func @transform_0(%arg0: i32, %arg1: i32) -> (i32, i32, i32) {
    %c0_i32 = arith.constant 0 : i32
    %c0_i32_0 = arith.constant 0 : i32
    return %arg0, %c0_i32, %arg1 : i32, i32, i32
  }
  func.func @transform_1(%arg0: i32, %arg1: i32) -> (i32, i32, i32) {
    %c0_i32 = arith.constant 0 : i32
    %c0_i32_0 = arith.constant 0 : i32
    %c0_i32_1 = arith.constant 0 : i32
    %c0_i32_2 = arith.constant 0 : i32
    return %c0_i32, %c0_i32_0, %c0_i32_1 : i32, i32, i32
  }
  func.func @transform_2(%arg0: i32, %arg1: i32) -> (i32, i32) {
    %c0_i32 = arith.constant 0 : i32
    %c0_i32_0 = arith.constant 0 : i32
    %c0_i32_1 = arith.constant 0 : i32
    return %c0_i32, %c0_i32_0 : i32, i32
  }
  func.func @transform_3(%arg0: i32, %arg1: i32) -> (i32, i32, i32, i32, i32) {
    %c0_i32 = arith.constant 0 : i32
    %c0_i32_0 = arith.constant 0 : i32
    %c0_i32_1 = arith.constant 0 : i32
    %c0_i32_2 = arith.constant 0 : i32
    return %arg0, %arg1, %c0_i32, %c0_i32_0, %c0_i32_1 : i32, i32, i32, i32, i32
  }
}

</mosaic_0001>

<bundles_post_ra>
// kernel: tile.9
= control target key start
LH: loop header
LB: loop body
LE: loop exit
PB: predicated region body
PF: predicated region fallthrough
CT: control target
= control target key end

     0   :  { %vm7_vm0 = vcmask 15360   ;;  %vm13_vm1 = vcmask 31760   ;;  %s39_s0 = inlined_call_operand.vmem [shape: f32[2,2], index: 0, kind: input, shape index: {}]   ;;  %s40_s1 = inlined_call_operand.vmem [shape: f32[1,4], index: 1, kind: output, shape index: {}]  }
   0x1   :  { %v4_v0 = vld [vmem:[%s39_s0] sm:$0x3]  ;;  %s22_s0 = smov 2  }
   0x2   :  { %5 = vst [vmem:[#allocation1] sm:$0x3] %v4_v0 }
   0x9   :  { %v10_v1 = vld [vmem:[#allocation1 + $0x1] sm:$0x1]   ;;  %v6_v2 = vld [vmem:[#allocation1] sm:$0x1]  }
   0xa   :  { %11 = vrot.lane.b32.xlu0 %v10_v1, %s22_s0  ;;  %8 = vst.msk [vmem:[#allocation0] sm:$0x1] %vm7_vm0, %v6_v2  }
  0x7c   :  { %v12_v3 = vpop.permute.xlu0 %11  }
  0x7d   :  { %14 = vst.msk [vmem:[#allocation0] sm:$0x1] %vm13_vm1, %v12_v3  }
  0x84   :  { %v18_v4 = vld [vmem:[#allocation0] sm:$0x1] }
  0x85   :  { %20 = vst [vmem:[%s40_s1] sm:$0x1] %v18_v4 }

// kernel: tile.8
= control target key start
LH: loop header
LB: loop body
LE: loop exit
PB: predicated region body
PF: predicated region fallthrough
CT: control target
= control target key end

     0   :  { %s22_s0 = inlined_call_operand.vmem [shape: f32[2], index: 0, kind: input, shape index: {}]   ;;  %s23_s1 = inlined_call_operand.vmem [shape: f32[2,2], index: 1, kind: output, shape index: {}]  }
   0x1   :  { %v4_v0 = vld [vmem:[%s22_s0] ss:$0 sm:$0xff] }
   0x2   :  { %5 = vst [vmem:[%s23_s1] sm:$0x3] %v4_v0 }

// kernel: expansion_block_forward.1
= control target key start
LH: loop header
LB: loop body
LE: loop exit
PB: predicated region body
PF: predicated region fallthrough
CT: control target
= control target key end

     0   :  { %s1515_s12 = smov 0   ;;  %s1517_s13 = smov 0   ;;  %s1821_s0 = inlined_call_operand.vmem [shape: f32[2,4,256], index: 0, kind: input, shape index: {}]   ;;  %s1822_s1 = inlined_call_operand.vmem [shape: f32[2,4,4], index: 1, kind: input, shape index: {}]   ;;  %s1823_s2 = inlined_call_operand.vmem [shape: f32[1,4], index: 2, kind: input, shape index: {}]   ;;  %s1824_s3 = inlined_call_operand.vmem [shape: f32[2,16,2,16,4], index: 3, kind: output, shape index: {}]  }
   0x1   :  { %s1519_s14 = smov 0  }
   0x2 LB: > { %s25_s15 = sadd.s32 1, %s1489_s13  ;;  %p1170_p0 = scmp.ge.s32.totalorder %s1493_s14, 1  ;;  %s1493_s14 = sphi %s1519_s14, %s13_s14   ;;  %s1489_s13 = sphi %s1517_s13, %s1826_s13   ;;  %s1485_s12 = sphi %s1515_s12, %s1825_s12  }
   0x3   : > { %p27_p1 = scmp.ge.s32.totalorder %s25_s15, 2  ;;  %p158_p2 = scmp.lt.s32.totalorder %s1493_s14, 3 }
   0x5   : > { %s1828_s15 = smov (%p27_p1, %s25_s15), 0  ;;  %p159_p3 = pnand %p1170_p0, %p158_p2 }
   0x6   : > { %p192_p4 = scmp.lt.s32.totalorder (!%p159_p3), %s1485_s12, 1  ;;  %v213_v2 = vld [vmem:[%s1822_s1] sm:$0xf] (!%p159_p3)  ;;  %vm385_vm0 = vcmask (!%p159_p3), 1043456   ;;  %v1209_v3 = vld [vmem:[%s1822_s1 + $0x4] sm:$0xf] (!%p159_p3) }
   0x7   : > { %162 = sbr.rel (%p159_p3) target bundleno = 519 (0x207), region = 32  ;;  %1345 = vmatprep.subr.msk.mxu0 (!%p159_p3), %vm385_vm0, %v213_v2  ;;  %1395 = vmatprep.subr.msk.mxu1 (!%p159_p3), %vm385_vm0, %v1209_v3  ;;  %vm288_vm1 = vcmask (!%p159_p3), 31744  }
   0x8   : > { %1346 = vmatpush3.msk.msra.mxu0 (!%p159_p3), %vm385_vm0, %v213_v2  ;;  %1396 = vmatpush3.msk.msra.mxu1 (!%p159_p3), %vm385_vm0, %v1209_v3 }
   0xe   : > { %s1830_s12 = smov (!%p192_p4, %s1485_s12), 1 }
   0xf   : > { %s1277_s16 = sshll.u32 %s1830_s12, 3  ;;  %s1278_s24 = sshll.u32 %s1830_s12, 9 }
  0x10   : > { %s199_s19 = scalar_lea.vmem %s1821_s0, %s1277_s16  ;;  %s1618_s29 = scalar_lea.vmem %s1824_s3, %s1278_s24 }
  0x11   : > { %v214_v0 = vld [vmem:[%s199_s19] sm:$0xff] }
  0x12   : > { %224 = vxpose.xlu0.b32.start.end [1/1] (short) %v214_v0, 128  ;;  %v222_v1 = vcombine.high %v214_v0, %v214_v0 }
  0x14   : > { %256 = vxpose.xlu1.b32.start.end [1/1] (short) %v222_v1, 128 }
  0x4f   : > { %652 = vxpose.xlu0.b32.start.end [1/1] (short) %v214_v0, 128 }
  0x51   : > { %684 = vxpose.xlu1.b32.start.end [1/1] (short) %v222_v1, 128 }
  0x92   : > { %v240_v4 = vpop.trf.xlu0 }
  0x93   : > { %1347 = vmatprep.mubr.msk.f32.mxu0 %vm288_vm1, %v240_v4  ;;  %v1613_v4 = vld [vmem:[%s1823_s2] ss:$0 sm:$0xff] }
  0x94   : > { %v272_v5 = vpop.trf.xlu1 }
  0x96   : > { %v241_v6 = vpop.trf.xlu0 }
  0x97   : > { %1348 = vmatmul.mubr.msk.f32.vlgmr.msra.gmra.mrb[0].mxu0 %vm288_vm1, %v241_v6 }
  0x98   : > { %v273_v7 = vpop.trf.xlu1 }
  0x9a   : > { %v242_v8 = vpop.trf.xlu0 }
  0x9b   : > { %1350 = vmatprep.mubr.msk.f32.mxu0 %vm288_vm1, %v242_v8 }
  0x9c   : > { %v274_v9 = vpop.trf.xlu1 }
  0x9e   : > { %v243_v10 = vpop.trf.xlu0 }
  0x9f   : > { %1351 = vmatmul.mubr.msk.f32.gmra.mrb[2].mxu0 %vm288_vm1, %v243_v10 }
  0xa0   : > { %v275_v11 = vpop.trf.xlu1 }
  0xa2   : > { %v244_v12 = vpop.trf.xlu0 }
  0xa3   : > { %1353 = vmatprep.mubr.msk.f32.mxu0 %vm288_vm1, %v244_v12 }
  0xa4   : > { %v276_v13 = vpop.trf.xlu1 }
  0xa6   : > { %v245_v14 = vpop.trf.xlu0 }
  0xa7   : > { %1354 = vmatmul.mubr.msk.f32.gmra.mrb[4].mxu0 %vm288_vm1, %v245_v14 }
  0xa8   : > { %v277_v15 = vpop.trf.xlu1 }
  0xaa   : > { %v246_v16 = vpop.trf.xlu0 }
  0xab   : > { %1356 = vmatprep.mubr.msk.f32.mxu0 %vm288_vm1, %v246_v16 }
  0xac   : > { %v278_v17 = vpop.trf.xlu1 }
  0xae   : > { %v247_v18 = vpop.trf.xlu0 }
  0xaf   : > { %1357 = vmatmul.mubr.msk.f32.gmra.mrb[6].mxu0 %vm288_vm1, %v247_v18 }
  0xb0   : > { %v279_v19 = vpop.trf.xlu1 }
  0xb2   : > { %v248_v20 = vpop.trf.xlu0 }
  0xb3   : > { %1359 = vmatprep.mubr.msk.f32.mxu0 %vm288_vm1, %v248_v20 }
  0xb4   : > { %v280_v21 = vpop.trf.xlu1 }
  0xb6   : > { %v249_v22 = vpop.trf.xlu0 }
  0xb7   : > { %1360 = vmatmul.mubr.msk.f32.gmra.mrb[8].mxu0 %vm288_vm1, %v249_v22 }
  0xb8   : > { %v281_v23 = vpop.trf.xlu1 }
  0xba   : > { %v250_v24 = vpop.trf.xlu0 }
  0xbb   : > { %1362 = vmatprep.mubr.msk.f32.mxu0 %vm288_vm1, %v250_v24 }
  0xbc   : > { %v282_v25 = vpop.trf.xlu1 }
  0xbe   : > { %v251_v26 = vpop.trf.xlu0 }
  0xbf   : > { %1363 = vmatmul.mubr.msk.f32.gmra.mrb[10].mxu0 %vm288_vm1, %v251_v26 }
  0xc0   : > { %v283_v27 = vpop.trf.xlu1 }
  0xc2   : > { %v252_v28 = vpop.trf.xlu0 }
  0xc3   : > { %1365 = vmatprep.mubr.msk.f32.mxu0 %vm288_vm1, %v252_v28 }
  0xc4   : > { %v284_v29 = vpop.trf.xlu1 }
  0xc6   : > { %v253_v30 = vpop.trf.xlu0 }
  0xc7   : > { %1366 = vmatmul.mubr.msk.f32.gmra.mrb[12].mxu0 %vm288_vm1, %v253_v30 }
  0xc8   : > { %v285_v31 = vpop.trf.xlu1 }
  0xca   : > { %v254_v32 = vpop.trf.xlu0 }
  0xcb   : > { %1368 = vmatprep.mubr.msk.f32.mxu0 %vm288_vm1, %v254_v32 }
  0xcc   : > { %v286_v33 = vpop.trf.xlu1 }
  0xce   : > { %v255_v34 = vpop.trf.xlu0 }
  0xcf   : > { %1369 = vmatmul.mubr.msk.f32.gmra.mrb[14].mxu0 %vm288_vm1, %v255_v34 }
  0xd0   : > { %1371 = vmatprep.mubr.msk.f32.mxu0 %vm288_vm1, %v272_v5  ;;  %v287_v35 = vpop.trf.xlu1 }
  0xd2   : > { %v668_v36 = vpop.trf.xlu0 }
  0xd3   : > { %1372 = vmatmul.mubr.msk.f32.gmra.mrb[16].mxu0 %vm288_vm1, %v273_v7  ;;  %1397 = vmatprep.mubr.msk.f32.mxu1 %vm288_vm1, %v668_v36 }
  0xd4   : > { %1374 = vmatprep.mubr.msk.f32.mxu0 %vm288_vm1, %v274_v9  ;;  %v700_v37 = vpop.trf.xlu1 }
  0xd6   : > { %v669_v38 = vpop.trf.xlu0 }
  0xd7   : > { %1375 = vmatmul.mubr.msk.f32.gmra.mrb[18].mxu0 %vm288_vm1, %v275_v11  ;;  %1398 = vmatmul.mubr.msk.f32.vlgmr.msra.gmra.mrb[0].mxu1 %vm288_vm1, %v669_v38 }
  0xd8   : > { %1377 = vmatprep.mubr.msk.f32.mxu0 %vm288_vm1, %v276_v13  ;;  %v701_v39 = vpop.trf.xlu1 }
  0xda   : > { %v670_v40 = vpop.trf.xlu0 }
  0xdb   : > { %1378 = vmatmul.mubr.msk.f32.gmra.mrb[20].mxu0 %vm288_vm1, %v277_v15  ;;  %1400 = vmatprep.mubr.msk.f32.mxu1 %vm288_vm1, %v670_v40 }
  0xdc   : > { %1380 = vmatprep.mubr.msk.f32.mxu0 %vm288_vm1, %v278_v17  ;;  %v702_v42 = vpop.trf.xlu1 }
  0xde   : > { %v671_v41 = vpop.trf.xlu0 }
  0xdf   : > { %1381 = vmatmul.mubr.msk.f32.gmra.mrb[22].mxu0 %vm288_vm1, %v279_v19  ;;  %1401 = vmatmul.mubr.msk.f32.gmra.mrb[2].mxu1 %vm288_vm1, %v671_v41 }
  0xe0   : > { %1383 = vmatprep.mubr.msk.f32.mxu0 %vm288_vm1, %v280_v21  ;;  %v703_v44 = vpop.trf.xlu1 }
  0xe2   : > { %v672_v43 = vpop.trf.xlu0 }
  0xe3   : > { %1384 = vmatmul.mubr.msk.f32.gmra.mrb[24].mxu0 %vm288_vm1, %v281_v23  ;;  %1403 = vmatprep.mubr.msk.f32.mxu1 %vm288_vm1, %v672_v43 }
  0xe4   : > { %1386 = vmatprep.mubr.msk.f32.mxu0 %vm288_vm1, %v282_v25  ;;  %v704_v47 = vpop.trf.xlu1 }
  0xe6   : > { %v673_v45 = vpop.trf.xlu0 }
  0xe7   : > { %1387 = vmatmul.mubr.msk.f32.gmra.mrb[26].mxu0 %vm288_vm1, %v283_v27  ;;  %1404 = vmatmul.mubr.msk.f32.gmra.mrb[4].mxu1 %vm288_vm1, %v673_v45 }
  0xe8   : > { %1389 = vmatprep.mubr.msk.f32.mxu0 %vm288_vm1, %v284_v29  ;;  %v705_v49 = vpop.trf.xlu1 }
  0xea   : > { %v674_v46 = vpop.trf.xlu0 }
  0xeb   : > { %1390 = vmatmul.mubr.msk.f32.gmra.mrb[28].mxu0 %vm288_vm1, %v285_v31  ;;  %1406 = vmatprep.mubr.msk.f32.mxu1 %vm288_vm1, %v674_v46 }
  0xec   : > { %1392 = vmatprep.mubr.msk.f32.mxu0 %vm288_vm1, %v286_v33  ;;  %v706_v52 = vpop.trf.xlu1 }
  0xee   : > { %v675_v48 = vpop.trf.xlu0 }
  0xef   : > { %1393 = vmatmul.mubr.msk.f32.gmra.mrb[30].mxu0 %vm288_vm1, %v287_v35  ;;  %1407 = vmatmul.mubr.msk.f32.gmra.mrb[6].mxu1 %vm288_vm1, %v675_v48 }
  0xf0   : > { %v707_v54 = vpop.trf.xlu1 }
  0xf2   : > { %v676_v50 = vpop.trf.xlu0 }
  0xf3   : > { %1409 = vmatprep.mubr.msk.f32.mxu1 %vm288_vm1, %v676_v50 }
  0xf4   : > { %v708_v57 = vpop.trf.xlu1 }
  0xf6   : > { %v677_v51 = vpop.trf.xlu0 }
  0xf7   : > { %1410 = vmatmul.mubr.msk.f32.gmra.mrb[8].mxu1 %vm288_vm1, %v677_v51 }
  0xf8   : > { %v709_v59 = vpop.trf.xlu1 }
  0xfa   : > { %v678_v53 = vpop.trf.xlu0 }
  0xfb   : > { %1412 = vmatprep.mubr.msk.f32.mxu1 %vm288_vm1, %v678_v53 }
  0xfc   : > { %v710_v62 = vpop.trf.xlu1 }
  0xfe   : > { %v679_v55 = vpop.trf.xlu0 }
  0xff   : > { %1413 = vmatmul.mubr.msk.f32.gmra.mrb[10].mxu1 %vm288_vm1, %v679_v55 }
 0x100   : > { %v711_v63 = vpop.trf.xlu1 }
 0x102   : > { %v680_v56 = vpop.trf.xlu0 }
 0x103   : > { %1415 = vmatprep.mubr.msk.f32.mxu1 %vm288_vm1, %v680_v56 }
 0x104   : > { %v712_v0 = vpop.trf.xlu1 }
 0x106   : > { %v681_v58 = vpop.trf.xlu0 }
 0x107   : > { %1416 = vmatmul.mubr.msk.f32.gmra.mrb[12].mxu1 %vm288_vm1, %v681_v58 }
 0x108   : > { %v713_v1 = vpop.trf.xlu1 }
 0x10a   : > { %v682_v60 = vpop.trf.xlu0 }
 0x10b   : > { %1418 = vmatprep.mubr.msk.f32.mxu1 %vm288_vm1, %v682_v60 }
 0x10c   : > { %v714_v2 = vpop.trf.xlu1 }
 0x10e   : > { %v683_v61 = vpop.trf.xlu0 }
 0x10f   : > { %1419 = vmatmul.mubr.msk.f32.gmra.mrb[14].mxu1 %vm288_vm1, %v683_v61 }
 0x110   : > { %1421 = vmatprep.mubr.msk.f32.mxu1 %vm288_vm1, %v700_v37  ;;  %v715_v3 = vpop.trf.xlu1 }
 0x113   : > { %1422 = vmatmul.mubr.msk.f32.gmra.mrb[16].mxu1 %vm288_vm1, %v701_v39 }
 0x114   : > { %1424 = vmatprep.mubr.msk.f32.mxu1 %vm288_vm1, %v702_v42 }
 0x117   : > { %1425 = vmatmul.mubr.msk.f32.gmra.mrb[18].mxu1 %vm288_vm1, %v703_v44 }
 0x118   : > { %1427 = vmatprep.mubr.msk.f32.mxu1 %vm288_vm1, %v704_v47 }
 0x11b   : > { %1428 = vmatmul.mubr.msk.f32.gmra.mrb[20].mxu1 %vm288_vm1, %v705_v49 }
 0x11c   : > { %1430 = vmatprep.mubr.msk.f32.mxu1 %vm288_vm1, %v706_v52 }
 0x11f   : > { %1431 = vmatmul.mubr.msk.f32.gmra.mrb[22].mxu1 %vm288_vm1, %v707_v54 }
 0x120   : > { %1433 = vmatprep.mubr.msk.f32.mxu1 %vm288_vm1, %v708_v57 }
 0x123   : > { %1434 = vmatmul.mubr.msk.f32.gmra.mrb[24].mxu1 %vm288_vm1, %v709_v59 }
 0x124   : > { %1436 = vmatprep.mubr.msk.f32.mxu1 %vm288_vm1, %v710_v62 }
 0x127   : > { %1437 = vmatmul.mubr.msk.f32.gmra.mrb[26].mxu1 %vm288_vm1, %v711_v63 }
 0x128   : > { %1439 = vmatprep.mubr.msk.f32.mxu1 %vm288_vm1, %v712_v0 }
 0x12b   : > { %1440 = vmatmul.mubr.msk.f32.gmra.mrb[28].mxu1 %vm288_vm1, %v713_v1 }
 0x12c   : > { %1442 = vmatprep.mubr.msk.f32.mxu1 %vm288_vm1, %v714_v2 }
 0x12f   : > { %1443 = vmatmul.mubr.msk.f32.gmra.mrb[30].mxu1 %vm288_vm1, %v715_v3 }
 0x16a   : > { %v1349_v5 = vpop.f32.mrb[0].mxu0 }
 0x16b   : > { %v461_v6 = vadd.f32 %v1349_v5, %v1613_v4  ;;  %v455_v7 = vpop.f32.mrb[1].mxu0 }
 0x16c   : > { %v456_v8 = vadd.f32 %v1613_v4, %v455_v7 }
 0x16d   : > { %615 = vst.msk [vmem:[%s1618_s29 + $0x8] sm:$0xff] %vm288_vm1, %v461_v6 }
 0x16e   : > { %614 = vst.msk [vmem:[%s1618_s29] sm:$0xff] %vm288_vm1, %v456_v8 }
 0x172   : > { %v1352_v9 = vpop.f32.mrb[2].mxu0 }
 0x173   : > { %v471_v10 = vadd.f32 %v1352_v9, %v1613_v4  ;;  %v465_v11 = vpop.f32.mrb[3].mxu0 }
 0x174   : > { %v466_v12 = vadd.f32 %v1613_v4, %v465_v11 }
 0x175   : > { %617 = vst.msk [vmem:[%s1618_s29 + $0x28] sm:$0xff] %vm288_vm1, %v471_v10 }
 0x176   : > { %616 = vst.msk [vmem:[%s1618_s29 + $0x20] sm:$0xff] %vm288_vm1, %v466_v12 }
 0x17a   : > { %v1355_v13 = vpop.f32.mrb[4].mxu0 }
 0x17b   : > { %v481_v14 = vadd.f32 %v1355_v13, %v1613_v4  ;;  %v475_v15 = vpop.f32.mrb[5].mxu0 }
 0x17c   : > { %v476_v16 = vadd.f32 %v1613_v4, %v475_v15 }
 0x17d   : > { %619 = vst.msk [vmem:[%s1618_s29 + $0x48] sm:$0xff] %vm288_vm1, %v481_v14 }
 0x17e   : > { %618 = vst.msk [vmem:[%s1618_s29 + $0x40] sm:$0xff] %vm288_vm1, %v476_v16 }
 0x182   : > { %v1358_v17 = vpop.f32.mrb[6].mxu0 }
 0x183   : > { %v491_v18 = vadd.f32 %v1358_v17, %v1613_v4  ;;  %v485_v19 = vpop.f32.mrb[7].mxu0 }
 0x184   : > { %v486_v20 = vadd.f32 %v1613_v4, %v485_v19 }
 0x185   : > { %621 = vst.msk [vmem:[%s1618_s29 + $0x68] sm:$0xff] %vm288_vm1, %v491_v18 }
 0x186   : > { %620 = vst.msk [vmem:[%s1618_s29 + $0x60] sm:$0xff] %vm288_vm1, %v486_v20 }
 0x18a   : > { %v1361_v21 = vpop.f32.mrb[8].mxu0 }
 0x18b   : > { %v501_v22 = vadd.f32 %v1361_v21, %v1613_v4  ;;  %v495_v23 = vpop.f32.mrb[9].mxu0 }
 0x18c   : > { %v496_v24 = vadd.f32 %v1613_v4, %v495_v23 }
 0x18d   : > { %623 = vst.msk [vmem:[%s1618_s29 + $0x88] sm:$0xff] %vm288_vm1, %v501_v22 }
 0x18e   : > { %622 = vst.msk [vmem:[%s1618_s29 + $0x80] sm:$0xff] %vm288_vm1, %v496_v24 }
 0x192   : > { %v1364_v25 = vpop.f32.mrb[10].mxu0 }
 0x193   : > { %v511_v26 = vadd.f32 %v1364_v25, %v1613_v4  ;;  %v505_v27 = vpop.f32.mrb[11].mxu0 }
 0x194   : > { %v506_v28 = vadd.f32 %v1613_v4, %v505_v27 }
 0x195   : > { %625 = vst.msk [vmem:[%s1618_s29 + $0xa8] sm:$0xff] %vm288_vm1, %v511_v26 }
 0x196   : > { %624 = vst.msk [vmem:[%s1618_s29 + $0xa0] sm:$0xff] %vm288_vm1, %v506_v28 }
 0x19a   : > { %v1367_v29 = vpop.f32.mrb[12].mxu0 }
 0x19b   : > { %v521_v30 = vadd.f32 %v1367_v29, %v1613_v4  ;;  %v515_v31 = vpop.f32.mrb[13].mxu0 }
 0x19c   : > { %v516_v32 = vadd.f32 %v1613_v4, %v515_v31 }
 0x19d   : > { %627 = vst.msk [vmem:[%s1618_s29 + $0xc8] sm:$0xff] %vm288_vm1, %v521_v30 }
 0x19e   : > { %626 = vst.msk [vmem:[%s1618_s29 + $0xc0] sm:$0xff] %vm288_vm1, %v516_v32 }
 0x1a2   : > { %v1370_v33 = vpop.f32.mrb[14].mxu0 }
 0x1a3   : > { %v531_v34 = vadd.f32 %v1370_v33, %v1613_v4  ;;  %v525_v35 = vpop.f32.mrb[15].mxu0 }
 0x1a4   : > { %v526_v36 = vadd.f32 %v1613_v4, %v525_v35 }
 0x1a5   : > { %629 = vst.msk [vmem:[%s1618_s29 + $0xe8] sm:$0xff] %vm288_vm1, %v531_v34 }
 0x1a6   : > { %628 = vst.msk [vmem:[%s1618_s29 + $0xe0] sm:$0xff] %vm288_vm1, %v526_v36  ;;  %v1373_v37 = vpop.f32.mrb[16].mxu0 }
 0x1a7   : > { %v541_v38 = vadd.f32 %v1373_v37, %v1613_v4  ;;  %v535_v39 = vpop.f32.mrb[17].mxu0 }
 0x1a8   : > { %v536_v40 = vadd.f32 %v1613_v4, %v535_v39 }
 0x1a9   : > { %631 = vst.msk [vmem:[%s1618_s29 + $0x108] sm:$0xff] %vm288_vm1, %v541_v38 }
 0x1aa   : > { %630 = vst.msk [vmem:[%s1618_s29 + $0x100] sm:$0xff] %vm288_vm1, %v536_v40  ;;  %v1376_v41 = vpop.f32.mrb[18].mxu0  ;;  %v1399_v42 = vpop.f32.mrb[0].mxu1 }
 0x1ab   : > { %v551_v43 = vadd.f32 %v1376_v41, %v1613_v4  ;;  %v887_v44 = vadd.f32 %v1399_v42, %v1613_v4  ;;  %v545_v45 = vpop.f32.mrb[19].mxu0  ;;  %v881_v46 = vpop.f32.mrb[1].mxu1 }
 0x1ac   : > { %v546_v47 = vadd.f32 %v1613_v4, %v545_v45  ;;  %v882_v48 = vadd.f32 %v1613_v4, %v881_v46 }
 0x1ad   : > { %633 = vst.msk [vmem:[%s1618_s29 + $0x128] sm:$0xff] %vm288_vm1, %v551_v43  ;;  %1244 = vst.msk [vmem:[%s1618_s29 + $0x18] sm:$0xff] %vm288_vm1, %v887_v44 }
 0x1ae   : > { %632 = vst.msk [vmem:[%s1618_s29 + $0x120] sm:$0xff] %vm288_vm1, %v546_v47  ;;  %1243 = vst.msk [vmem:[%s1618_s29 + $0x10] sm:$0xff] %vm288_vm1, %v882_v48  ;;  %v1379_v49 = vpop.f32.mrb[20].mxu0 }
 0x1af   : > { %v561_v50 = vadd.f32 %v1379_v49, %v1613_v4  ;;  %v555_v51 = vpop.f32.mrb[21].mxu0 }
 0x1b0   : > { %v556_v52 = vadd.f32 %v1613_v4, %v555_v51 }
 0x1b1   : > { %635 = vst.msk [vmem:[%s1618_s29 + $0x148] sm:$0xff] %vm288_vm1, %v561_v50 }
 0x1b2   : > { %634 = vst.msk [vmem:[%s1618_s29 + $0x140] sm:$0xff] %vm288_vm1, %v556_v52  ;;  %v1382_v53 = vpop.f32.mrb[22].mxu0  ;;  %v1402_v54 = vpop.f32.mrb[2].mxu1 }
 0x1b3   : > { %v571_v55 = vadd.f32 %v1382_v53, %v1613_v4  ;;  %v897_v56 = vadd.f32 %v1402_v54, %v1613_v4  ;;  %v565_v57 = vpop.f32.mrb[23].mxu0  ;;  %v891_v58 = vpop.f32.mrb[3].mxu1 }
 0x1b4   : > { %v566_v59 = vadd.f32 %v1613_v4, %v565_v57  ;;  %v892_v60 = vadd.f32 %v1613_v4, %v891_v58 }
 0x1b5   : > { %637 = vst.msk [vmem:[%s1618_s29 + $0x168] sm:$0xff] %vm288_vm1, %v571_v55  ;;  %1246 = vst.msk [vmem:[%s1618_s29 + $0x38] sm:$0xff] %vm288_vm1, %v897_v56 }
 0x1b6   : > { %636 = vst.msk [vmem:[%s1618_s29 + $0x160] sm:$0xff] %vm288_vm1, %v566_v59  ;;  %1245 = vst.msk [vmem:[%s1618_s29 + $0x30] sm:$0xff] %vm288_vm1, %v892_v60  ;;  %v1385_v61 = vpop.f32.mrb[24].mxu0 }
 0x1b7   : > { %v581_v62 = vadd.f32 %v1385_v61, %v1613_v4  ;;  %v575_v63 = vpop.f32.mrb[25].mxu0 }
 0x1b8   : > { %v576_v0 = vadd.f32 %v1613_v4, %v575_v63 }
 0x1b9   : > { %639 = vst.msk [vmem:[%s1618_s29 + $0x188] sm:$0xff] %vm288_vm1, %v581_v62 }
 0x1ba   : > { %638 = vst.msk [vmem:[%s1618_s29 + $0x180] sm:$0xff] %vm288_vm1, %v576_v0  ;;  %v1388_v1 = vpop.f32.mrb[26].mxu0  ;;  %v1405_v2 = vpop.f32.mrb[4].mxu1 }
 0x1bb   : > { %v591_v3 = vadd.f32 %v1388_v1, %v1613_v4  ;;  %v907_v5 = vadd.f32 %v1405_v2, %v1613_v4  ;;  %v585_v6 = vpop.f32.mrb[27].mxu0  ;;  %v901_v7 = vpop.f32.mrb[5].mxu1 }
 0x1bc   : > { %v586_v8 = vadd.f32 %v1613_v4, %v585_v6  ;;  %v902_v9 = vadd.f32 %v1613_v4, %v901_v7 }
 0x1bd   : > { %641 = vst.msk [vmem:[%s1618_s29 + $0x1a8] sm:$0xff] %vm288_vm1, %v591_v3  ;;  %1248 = vst.msk [vmem:[%s1618_s29 + $0x58] sm:$0xff] %vm288_vm1, %v907_v5 }
 0x1be   : > { %640 = vst.msk [vmem:[%s1618_s29 + $0x1a0] sm:$0xff] %vm288_vm1, %v586_v8  ;;  %1247 = vst.msk [vmem:[%s1618_s29 + $0x50] sm:$0xff] %vm288_vm1, %v902_v9  ;;  %v1391_v10 = vpop.f32.mrb[28].mxu0 }
 0x1bf   : > { %v601_v11 = vadd.f32 %v1391_v10, %v1613_v4  ;;  %v595_v12 = vpop.f32.mrb[29].mxu0 }
 0x1c0   : > { %v596_v13 = vadd.f32 %v1613_v4, %v595_v12 }
 0x1c1   : > { %643 = vst.msk [vmem:[%s1618_s29 + $0x1c8] sm:$0xff] %vm288_vm1, %v601_v11 }
 0x1c2   : > { %642 = vst.msk [vmem:[%s1618_s29 + $0x1c0] sm:$0xff] %vm288_vm1, %v596_v13  ;;  %v1394_v14 = vpop.f32.mrb[30].mxu0  ;;  %v1408_v15 = vpop.f32.mrb[6].mxu1 }
 0x1c3   : > { %v611_v16 = vadd.f32 %v1394_v14, %v1613_v4  ;;  %v917_v17 = vadd.f32 %v1408_v15, %v1613_v4  ;;  %v605_v18 = vpop.f32.mrb[31].mxu0  ;;  %v911_v19 = vpop.f32.mrb[7].mxu1 }
 0x1c4   : > { %v606_v20 = vadd.f32 %v1613_v4, %v605_v18  ;;  %v912_v21 = vadd.f32 %v1613_v4, %v911_v19 }
 0x1c5   : > { %645 = vst.msk [vmem:[%s1618_s29 + $0x1e8] sm:$0xff] %vm288_vm1, %v611_v16  ;;  %1250 = vst.msk [vmem:[%s1618_s29 + $0x78] sm:$0xff] %vm288_vm1, %v917_v17 }
 0x1c6   : > { %644 = vst.msk [vmem:[%s1618_s29 + $0x1e0] sm:$0xff] %vm288_vm1, %v606_v20  ;;  %1249 = vst.msk [vmem:[%s1618_s29 + $0x70] sm:$0xff] %vm288_vm1, %v912_v21 }
 0x1ca   : > { %v1411_v22 = vpop.f32.mrb[8].mxu1 }
 0x1cb   : > { %v927_v23 = vadd.f32 %v1411_v22, %v1613_v4  ;;  %v921_v24 = vpop.f32.mrb[9].mxu1 }
 0x1cc   : > { %v922_v25 = vadd.f32 %v1613_v4, %v921_v24 }
 0x1cd   : > { %1252 = vst.msk [vmem:[%s1618_s29 + $0x98] sm:$0xff] %vm288_vm1, %v927_v23 }
 0x1ce   : > { %1251 = vst.msk [vmem:[%s1618_s29 + $0x90] sm:$0xff] %vm288_vm1, %v922_v25 }
 0x1d2   : > { %v1414_v26 = vpop.f32.mrb[10].mxu1 }
 0x1d3   : > { %v937_v27 = vadd.f32 %v1414_v26, %v1613_v4  ;;  %v931_v28 = vpop.f32.mrb[11].mxu1 }
 0x1d4   : > { %v932_v29 = vadd.f32 %v1613_v4, %v931_v28 }
 0x1d5   : > { %1254 = vst.msk [vmem:[%s1618_s29 + $0xb8] sm:$0xff] %vm288_vm1, %v937_v27 }
 0x1d6   : > { %1253 = vst.msk [vmem:[%s1618_s29 + $0xb0] sm:$0xff] %vm288_vm1, %v932_v29 }
 0x1da   : > { %v1417_v30 = vpop.f32.mrb[12].mxu1 }
 0x1db   : > { %v947_v31 = vadd.f32 %v1417_v30, %v1613_v4  ;;  %v941_v32 = vpop.f32.mrb[13].mxu1 }
 0x1dc   : > { %v942_v33 = vadd.f32 %v1613_v4, %v941_v32 }
 0x1dd   : > { %1256 = vst.msk [vmem:[%s1618_s29 + $0xd8] sm:$0xff] %vm288_vm1, %v947_v31 }
 0x1de   : > { %1255 = vst.msk [vmem:[%s1618_s29 + $0xd0] sm:$0xff] %vm288_vm1, %v942_v33 }
 0x1e2   : > { %v1420_v34 = vpop.f32.mrb[14].mxu1 }
 0x1e3   : > { %v957_v35 = vadd.f32 %v1420_v34, %v1613_v4  ;;  %v951_v36 = vpop.f32.mrb[15].mxu1 }
 0x1e4   : > { %v952_v37 = vadd.f32 %v1613_v4, %v951_v36 }
 0x1e5   : > { %1258 = vst.msk [vmem:[%s1618_s29 + $0xf8] sm:$0xff] %vm288_vm1, %v957_v35 }
 0x1e6   : > { %1257 = vst.msk [vmem:[%s1618_s29 + $0xf0] sm:$0xff] %vm288_vm1, %v952_v37  ;;  %v1423_v38 = vpop.f32.mrb[16].mxu1 }
 0x1e7   : > { %v967_v39 = vadd.f32 %v1423_v38, %v1613_v4  ;;  %v961_v40 = vpop.f32.mrb[17].mxu1 }
 0x1e8   : > { %v962_v41 = vadd.f32 %v1613_v4, %v961_v40 }
 0x1e9   : > { %1260 = vst.msk [vmem:[%s1618_s29 + $0x118] sm:$0xff] %vm288_vm1, %v967_v39 }
 0x1ea   : > { %1259 = vst.msk [vmem:[%s1618_s29 + $0x110] sm:$0xff] %vm288_vm1, %v962_v41  ;;  %v1426_v42 = vpop.f32.mrb[18].mxu1 }
 0x1eb   : > { %v977_v43 = vadd.f32 %v1426_v42, %v1613_v4  ;;  %v971_v44 = vpop.f32.mrb[19].mxu1 }
 0x1ec   : > { %v972_v45 = vadd.f32 %v1613_v4, %v971_v44 }
 0x1ed   : > { %1262 = vst.msk [vmem:[%s1618_s29 + $0x138] sm:$0xff] %vm288_vm1, %v977_v43 }
 0x1ee   : > { %1261 = vst.msk [vmem:[%s1618_s29 + $0x130] sm:$0xff] %vm288_vm1, %v972_v45  ;;  %v1429_v46 = vpop.f32.mrb[20].mxu1 }
 0x1ef   : > { %v987_v47 = vadd.f32 %v1429_v46, %v1613_v4  ;;  %v981_v48 = vpop.f32.mrb[21].mxu1 }
 0x1f0   : > { %v982_v49 = vadd.f32 %v1613_v4, %v981_v48 }
 0x1f1   : > { %1264 = vst.msk [vmem:[%s1618_s29 + $0x158] sm:$0xff] %vm288_vm1, %v987_v47 }
 0x1f2   : > { %1263 = vst.msk [vmem:[%s1618_s29 + $0x150] sm:$0xff] %vm288_vm1, %v982_v49  ;;  %v1432_v50 = vpop.f32.mrb[22].mxu1 }
 0x1f3   : > { %v997_v51 = vadd.f32 %v1432_v50, %v1613_v4  ;;  %v991_v52 = vpop.f32.mrb[23].mxu1 }
 0x1f4   : > { %v992_v53 = vadd.f32 %v1613_v4, %v991_v52 }
 0x1f5   : > { %1266 = vst.msk [vmem:[%s1618_s29 + $0x178] sm:$0xff] %vm288_vm1, %v997_v51 }
 0x1f6   : > { %1265 = vst.msk [vmem:[%s1618_s29 + $0x170] sm:$0xff] %vm288_vm1, %v992_v53  ;;  %v1435_v54 = vpop.f32.mrb[24].mxu1 }
 0x1f7   : > { %v1007_v55 = vadd.f32 %v1435_v54, %v1613_v4  ;;  %v1001_v56 = vpop.f32.mrb[25].mxu1 }
 0x1f8   : > { %v1002_v57 = vadd.f32 %v1613_v4, %v1001_v56 }
 0x1f9   : > { %1268 = vst.msk [vmem:[%s1618_s29 + $0x198] sm:$0xff] %vm288_vm1, %v1007_v55 }
 0x1fa   : > { %1267 = vst.msk [vmem:[%s1618_s29 + $0x190] sm:$0xff] %vm288_vm1, %v1002_v57  ;;  %v1438_v58 = vpop.f32.mrb[26].mxu1 }
 0x1fb   : > { %v1017_v59 = vadd.f32 %v1438_v58, %v1613_v4  ;;  %v1011_v60 = vpop.f32.mrb[27].mxu1 }
 0x1fc   : > { %v1012_v61 = vadd.f32 %v1613_v4, %v1011_v60 }
 0x1fd   : > { %1270 = vst.msk [vmem:[%s1618_s29 + $0x1b8] sm:$0xff] %vm288_vm1, %v1017_v59 }
 0x1fe   : > { %1269 = vst.msk [vmem:[%s1618_s29 + $0x1b0] sm:$0xff] %vm288_vm1, %v1012_v61  ;;  %v1441_v62 = vpop.f32.mrb[28].mxu1 }
 0x1ff   : > { %v1027_v63 = vadd.f32 %v1441_v62, %v1613_v4  ;;  %v1021_v0 = vpop.f32.mrb[29].mxu1 }
 0x200   : > { %v1022_v1 = vadd.f32 %v1613_v4, %v1021_v0 }
 0x201   : > { %1272 = vst.msk [vmem:[%s1618_s29 + $0x1d8] sm:$0xff] %vm288_vm1, %v1027_v63 }
 0x202   : > { %1271 = vst.msk [vmem:[%s1618_s29 + $0x1d0] sm:$0xff] %vm288_vm1, %v1022_v1  ;;  %v1444_v2 = vpop.f32.mrb[30].mxu1 }
 0x203   : > { %v1037_v3 = vadd.f32 %v1444_v2, %v1613_v4  ;;  %v1031_v5 = vpop.f32.mrb[31].mxu1 }
 0x204   : > { %v1032_v6 = vadd.f32 %v1613_v4, %v1031_v5 }
 0x205   : > { %1274 = vst.msk [vmem:[%s1618_s29 + $0x1f8] sm:$0xff] %vm288_vm1, %v1037_v3 }
 0x206   : > { %1273 = vst.msk [vmem:[%s1618_s29 + $0x1f0] sm:$0xff] %vm288_vm1, %v1032_v6 }
 0x207 PF: > { %s13_s14 = sadd.s32 1, %s1493_s14   ;;  %s1825_s12 = smov %s1489_s13 }
 0x208   : > { %p10_p5 = scmp.ge.s32.totalorder %s13_s14, 4   ;;  %s1826_s13 = smov %s1828_s15 }
 0x20a   :  { %12 = sbr.rel (!%p10_p5) target bundleno = 2 (0x2), region = 64 }

</bundles_post_ra>
